<compile_context>
chip_gen: v7x
topology: tpu7x:2x2x1
jax: 0.10.0
libtpu: 0.0.40
codegen_flags: <defaults>
</compile_context>

<pallas_src>
import functools

import jax
import jax.numpy as jnp
from jax.experimental import pallas as pl
from jax.experimental.pallas import tpu as pltpu

D1, D2, D3 = 256, 128, 64   # hidden sizes from the module
D3P = 128                   # D3 zero-padded to a full lane width


def _round_up(n, m):
    return (n + m - 1) // m * m


def _lrelu(v, leak):
    return jnp.where(v > 0, v, leak * v)


def mlp_kernel(x_ref, w0_ref, b0_ref, w1_ref, b1_ref, w2_ref, b2_ref,
               w3_ref, b3_ref, o_ref, *, leak, head):
    # hidden0: Linear(F, 256) + LeakyReLU  (Dropout == identity in eval)
    # x arrives f32 straight from HBM; cast to bf16 here (VPU) instead of paying a
    # separate wrapper-side pad/cast pass over HBM.
    h = jnp.dot(x_ref[...].astype(jnp.bfloat16), w0_ref[...],
                preferred_element_type=jnp.float32) + b0_ref[...]
    h = _lrelu(h, leak)

    # hidden1: Linear(256, 128) + LeakyReLU
    h = jnp.dot(h.astype(jnp.bfloat16), w1_ref[...],
                preferred_element_type=jnp.float32) + b1_ref[...]
    h = _lrelu(h, leak)

    # hidden2: Linear(128, 64 -> 128 padded) + LeakyReLU (padded cols stay exactly 0)
    h = jnp.dot(h.astype(jnp.bfloat16), w2_ref[...],
                preferred_element_type=jnp.float32) + b2_ref[...]
    h = _lrelu(h, leak)

    # out: Linear(64, n_out) + Sigmoid — kept fully f32 (it is tiny).
    if head == "row":
        # n_out == 1, TB % 128 == 0: lane-dense (1, TB) logits (batch on lanes).
        # w3 sits in row 0 of an (8, 128) f32 slab (rows 1..7 zero) so the MXU sees
        # an (8,128)x(128,TB) matmul; keep only row 0.
        s = jnp.dot(w3_ref[...], h.T, preferred_element_type=jnp.float32)
        logits = s[0:1, :] + b3_ref[...]
    elif head == "col":
        # n_out == 1, small batch tile: VPU multiply + lane reduce (XLU), (TB, 1).
        logits = jnp.sum(h * w3_ref[...], axis=-1, keepdims=True) + b3_ref[...]
    else:
        # general n_out: (TB, 128) @ (128, NP) f32 matmul.
        logits = jnp.dot(h, w3_ref[...],
                         preferred_element_type=jnp.float32) + b3_ref[...]

    # exact sigmoid: exp on the EUP, exact f32 divide (no approx reciprocal)
    o_ref[...] = 1.0 / (1.0 + jnp.exp(-logits))


def _vmem_budget_bytes():
    """Generation-aware scoped-VMEM budget, leaving headroom for Mosaic scratch."""
    mib = 1024 * 1024
    try:
        cap = int(pltpu.get_tpu_info().vmem_capacity_bytes)
    except Exception:
        cap = 0
    if cap < 48 * mib:            # unknown / implausible -> conservative default
        return 48 * mib
    if cap <= 64 * mib:           # v7x-class TensorCore (64 MiB physical)
        return cap - 12 * mib
    return min(cap - 24 * mib, 112 * mib)   # v5e / v6e (128 MiB physical)


def simple_discriminator_forward(x_nchw, params, leak):
    """x_nchw: (B, C, H, W) float32. Returns (B, n_out) float32."""
    B = x_nchw.shape[0]
    x = x_nchw.reshape(B, -1).astype(jnp.float32)   # same as torch x.view(B, -1)
    F = x.shape[1]

    w0, b0, w1, b1, w2, b2, w3, b3 = params
    n_out = w3.shape[1]
    vpu_head = (n_out == 1)

    # ---- lane alignment of the K dim (only pads when F % 128 != 0) ----
    Fp = _round_up(F, 128)
    if Fp != F:
        x = jnp.pad(x, ((0, 0), (0, Fp - F)))

    # ---- tiny batches: pad rows up to one sublane tile (array is tiny -> free) ----
    B_work = B
    if B < 8:
        x = jnp.pad(x, ((0, 8 - B), (0, 0)))
        B_work = 8

    # ---- weights: bf16 body for the MXU, f32 head & biases; zero padding is exact --
    w0p = jnp.zeros((Fp, D1), jnp.float32).at[:F, :].set(w0).astype(jnp.bfloat16)
    b0p = b0.reshape(1, D1).astype(jnp.float32)
    w1p = w1.astype(jnp.bfloat16)
    b1p = b1.reshape(1, D2).astype(jnp.float32)
    w2p = jnp.zeros((D2, D3P), jnp.float32).at[:, :D3].set(w2).astype(jnp.bfloat16)
    b2p = jnp.zeros((1, D3P), jnp.float32).at[:, :D3].set(b2.reshape(1, D3))

    # ---- VMEM-aware batch-tile selection ----
    vmem_budget = _vmem_budget_bytes()
    B8 = _round_up(B_work, 8)
    NP = 1 if vpu_head else _round_up(n_out, 128)
    w3_bytes = (8 * D3P if vpu_head else D3P * NP) * 4
    # Default pipeline double-buffers every operand (even constant-index weights);
    # count 2 buffers each.  Biases pad to 8 sublanes in VMEM.
    resident = 2 * (Fp * D1 * 2 + D1 * D2 * 2 + D2 * D3P * 2 + w3_bytes
                    + 8 * (D1 + D2 + D3P + 128) * 4)

    def tile_bytes(tb):
        x_io = 2 * tb * Fp * 4                      # double-buffered f32 x tile
        out_io = 2 * tb * max(NP, 128) * 4          # output tile (lane-padded bound)
        interm = tb * Fp * 2 + 4 * tb * D1 * 4      # bf16 x copy + h tiles / temps
        return x_io + out_io + interm

    TB = 8
    for cand in (1024, 512, 256, 128, 64, 32, 16, 8):
        if cand <= B8 and resident + tile_bytes(cand) <= vmem_budget:
            TB = cand
            break
    # Guarantee >= 2 grid steps when the batch allows it so the 'parallel' batch
    # axis shards across both TensorCores on v7x (megacore on v5e/v6e).
    if pl.cdiv(B_work, TB) < 2 and TB > 8:
        TB = max(8, _round_up(TB // 2, 8))

    G = pl.cdiv(B_work, TB)
    B_pad = G * TB

    # ---- head layout & output spec ----
    if vpu_head and TB % 128 == 0:
        head = "row"                                # lane-dense (1, TB) output row
        w3p = jnp.zeros((8, D3P), jnp.float32).at[0, :D3].set(w3[:, 0])
        b3p = b3.reshape(1, 1).astype(jnp.float32)
        out_shape = jax.ShapeDtypeStruct((1, B_pad), jnp.float32)
        out_spec = pl.BlockSpec((1, TB), lambda i: (0, i))
    elif vpu_head:
        head = "col"                                # (TB, 1) column, tiny batches
        w3p = jnp.zeros((1, D3P), jnp.float32).at[:, :D3].set(w3.T)
        b3p = b3.reshape(1, 1).astype(jnp.float32)
        out_shape = jax.ShapeDtypeStruct((B_pad, 1), jnp.float32)
        out_spec = pl.BlockSpec((TB, 1), lambda i: (i, 0))
    else:
        head = "mat"                                # general n_out, NP-padded lanes
        w3p = jnp.zeros((D3P, NP), jnp.float32).at[:D3, :n_out].set(w3)
        b3p = jnp.zeros((1, NP), jnp.float32).at[:, :n_out].set(b3.reshape(1, n_out))
        out_shape = jax.ShapeDtypeStruct((B_pad, NP), jnp.float32)
        out_spec = pl.BlockSpec((TB, NP), lambda i: (i, 0))

    const = lambda shape: pl.BlockSpec(shape, lambda i: (0, 0))   # VMEM-resident

    kernel = functools.partial(mlp_kernel, leak=leak, head=head)

    out = pl.pallas_call(
        kernel,
        out_shape=out_shape,
        grid_spec=pltpu.PrefetchScalarGridSpec(
            num_scalar_prefetch=0,
            grid=(G,),
            in_specs=[
                pl.BlockSpec((TB, Fp), lambda i: (i, 0)),   # x tile — pipelined stream
                const((Fp, D1)), const((1, D1)),
                const((D1, D2)), const((1, D2)),
                const((D2, D3P)), const((1, D3P)),
                const(w3p.shape), const(b3p.shape),
            ],
            out_specs=out_spec,
        ),
        compiler_params=pltpu.CompilerParams(
            dimension_semantics=("parallel",),     # megacore / 2-TC sharding
            vmem_limit_bytes=int(vmem_budget),
        ),
    )(x, w0p, b0p, w1p, b1p, w2p, b2p, w3p, b3p)

    if head == "row":
        return out[0, :B].reshape(B, 1)
    if head == "col":
        return out[:B]
    return out[:B, :n_out]


def init_params(key, nfeatures_flat, n_out):
    """Deterministic init mimicking nn.Linear's U(-1/sqrt(fan_in), 1/sqrt(fan_in)).
    Weights stored pre-transposed as (in, out)."""
    dims = [nfeatures_flat, D1, D2, D3, n_out]
    params = []
    keys = jax.random.split(key, 2 * (len(dims) - 1))
    for i in range(len(dims) - 1):
        fan_in, fan_out = dims[i], dims[i + 1]
        bound = 1.0 / jnp.sqrt(jnp.float32(fan_in))
        w = jax.random.uniform(keys[2 * i], (fan_in, fan_out), jnp.float32,
                               minval=-bound, maxval=bound)
        b = jax.random.uniform(keys[2 * i + 1], (1, fan_out), jnp.float32,
                               minval=-bound, maxval=bound)
        params += [w, b]
    return tuple(params)


def reference_forward(x_nchw, params, leak):
    """Pure-JAX f32 reference matching PyTorch eval-mode forward."""
    B = x_nchw.shape[0]
    x = x_nchw.reshape(B, -1).astype(jnp.float32)
    w0, b0, w1, b1, w2, b2, w3, b3 = params
    lrelu = lambda v: jnp.where(v > 0, v, leak * v)
    h = lrelu(x @ w0 + b0)
    h = lrelu(h @ w1 + b1)
    h = lrelu(h @ w2 + b2)
    return jax.nn.sigmoid(h @ w3 + b3)


if __name__ == "__main__":
    root = jax.random.PRNGKey(0)
    leak = 0.2

    # (B, C, H, W, n_out):
    #  case 0: tiny batch, lane-aligned F, n_out=1  -> "col" head, 1 grid step
    #  case 1: F=675 (unaligned), B=10, n_out=3     -> padded K, partial last tile,
    #                                                  matmul head, 2 grid steps
    #  case 2: B=300, n_out=1                       -> TB=256, 2 grid steps,
    #                                                  lane-dense "row" head
    cases = [(2, 4, 16, 16, 1), (10, 3, 15, 15, 3), (300, 4, 16, 16, 1)]

    for case_idx, (B, C, H, W, n_out) in enumerate(cases):
        k_x, k_p = jax.random.split(jax.random.fold_in(root, case_idx))
        x = jax.random.normal(k_x, (B, C, H, W), dtype=jnp.float32)
        params = init_params(k_p, C * H * W, n_out)

        out = jax.block_until_ready(simple_discriminator_forward(x, params, leak))
        ref = reference_forward(x, params, leak)

        assert out.shape == (B, n_out), (case_idx, out.shape)
        # bf16 MXU body vs. f32 reference: loosened tolerance.
        assert jnp.allclose(out, ref, atol=2e-2, rtol=2e-2), (case_idx, out, ref)

    print("KERNEL_OK")
</pallas_src>

<mosaic_0001>
module attributes {stable_mosaic.version = 11 : i64} {
  func.func @mlp_kernel(%arg0: i32, %arg1: memref<8x1024xf32, #tpu.memory_space<vmem>>, %arg2: memref<1024x256xbf16, #tpu.memory_space<vmem>>, %arg3: memref<1x256xf32, #tpu.memory_space<vmem>>, %arg4: memref<256x128xbf16, #tpu.memory_space<vmem>>, %arg5: memref<1x128xf32, #tpu.memory_space<vmem>>, %arg6: memref<128x128xbf16, #tpu.memory_space<vmem>>, %arg7: memref<1x128xf32, #tpu.memory_space<vmem>>, %arg8: memref<1x128xf32, #tpu.memory_space<vmem>>, %arg9: memref<1x1xf32, #tpu.memory_space<vmem>>, %arg10: memref<8x1xf32, #tpu.memory_space<vmem>>) attributes {dimension_semantics = [#tpu.dimension_semantics<parallel>], iteration_bounds = array<i64: 1>, scalar_prefetch = 0 : i64, scratch_operands = 0 : i64, tpu.core_type = #tpu.core_type<tc>, window_params = [{transform_indices = @transform_0, window_bounds = array<i64: 8, 1024>}, {pipeline_mode = #tpu.pipeline_mode<synchronous>, transform_indices = @transform_1, window_bounds = array<i64: 1024, 256>}, {pipeline_mode = #tpu.pipeline_mode<synchronous>, transform_indices = @transform_2, window_bounds = array<i64: 1, 256>}, {pipeline_mode = #tpu.pipeline_mode<synchronous>, transform_indices = @transform_3, window_bounds = array<i64: 256, 128>}, {pipeline_mode = #tpu.pipeline_mode<synchronous>, transform_indices = @transform_4, window_bounds = array<i64: 1, 128>}, {pipeline_mode = #tpu.pipeline_mode<synchronous>, transform_indices = @transform_5, window_bounds = array<i64: 128, 128>}, {pipeline_mode = #tpu.pipeline_mode<synchronous>, transform_indices = @transform_6, window_bounds = array<i64: 1, 128>}, {pipeline_mode = #tpu.pipeline_mode<synchronous>, transform_indices = @transform_7, window_bounds = array<i64: 1, 128>}, {pipeline_mode = #tpu.pipeline_mode<synchronous>, transform_indices = @transform_8, window_bounds = array<i64: 1, 1>}, {transform_indices = @transform_9, window_bounds = array<i64: 8, 1>}]} {
    %c0 = arith.constant 0 : index
    %c0_0 = arith.constant 0 : index
    %0 = vector.load %arg1[%c0, %c0_0] : memref<8x1024xf32, #tpu.memory_space<vmem>>, vector<8x1024xf32>
    %1 = arith.truncf %0 : vector<8x1024xf32> to vector<8x1024xbf16>
    %c0_1 = arith.constant 0 : index
    %c0_2 = arith.constant 0 : index
    %2 = vector.load %arg2[%c0_1, %c0_2] : memref<1024x256xbf16, #tpu.memory_space<vmem>>, vector<1024x256xbf16>
    %cst = arith.constant dense<0.000000e+00> : vector<8x256xf32>
    %3 = tpu.matmul %1, %2, %cst {dimension_numbers = #tpu.dot_dimension_numbers<[1], [0], [0], [1], [0, 0, 1, 1], [], []>} : vector<8x1024xbf16>, vector<1024x256xbf16>, vector<8x256xf32> -> vector<8x256xf32>
    %c0_3 = arith.constant 0 : index
    %c0_4 = arith.constant 0 : index
    %4 = vector.load %arg3[%c0_3, %c0_4] : memref<1x256xf32, #tpu.memory_space<vmem>>, vector<1x256xf32>
    %5 = vector.broadcast %4 : vector<1x256xf32> to vector<8x256xf32>
    %6 = arith.addf %3, %5 : vector<8x256xf32>
    %cst_5 = arith.constant 0.000000e+00 : f32
    %7 = vector.broadcast %cst_5 : f32 to vector<8x256xf32>
    %8 = arith.cmpf ogt, %6, %7 : vector<8x256xf32>
    %cst_6 = arith.constant 2.000000e-01 : f32
    %9 = vector.broadcast %cst_6 : f32 to vector<8x256xf32>
    %10 = arith.mulf %9, %6 : vector<8x256xf32>
    %11 = arith.select %8, %6, %10 : vector<8x256xi1>, vector<8x256xf32>
    %12 = arith.truncf %11 : vector<8x256xf32> to vector<8x256xbf16>
    %c0_7 = arith.constant 0 : index
    %c0_8 = arith.constant 0 : index
    %13 = vector.load %arg4[%c0_7, %c0_8] : memref<256x128xbf16, #tpu.memory_space<vmem>>, vector<256x128xbf16>
    %cst_9 = arith.constant dense<0.000000e+00> : vector<8x128xf32>
    %14 = tpu.matmul %12, %13, %cst_9 {dimension_numbers = #tpu.dot_dimension_numbers<[1], [0], [0], [1], [0, 0, 1, 1], [], []>} : vector<8x256xbf16>, vector<256x128xbf16>, vector<8x128xf32> -> vector<8x128xf32>
    %c0_10 = arith.constant 0 : index
    %c0_11 = arith.constant 0 : index
    %15 = vector.load %arg5[%c0_10, %c0_11] : memref<1x128xf32, #tpu.memory_space<vmem>>, vector<1x128xf32>
    %16 = vector.broadcast %15 : vector<1x128xf32> to vector<8x128xf32>
    %17 = arith.addf %14, %16 : vector<8x128xf32>
    %cst_12 = arith.constant 0.000000e+00 : f32
    %18 = vector.broadcast %cst_12 : f32 to vector<8x128xf32>
    %19 = arith.cmpf ogt, %17, %18 : vector<8x128xf32>
    %cst_13 = arith.constant 2.000000e-01 : f32
    %20 = vector.broadcast %cst_13 : f32 to vector<8x128xf32>
    %21 = arith.mulf %20, %17 : vector<8x128xf32>
    %22 = arith.select %19, %17, %21 : vector<8x128xi1>, vector<8x128xf32>
    %23 = arith.truncf %22 : vector<8x128xf32> to vector<8x128xbf16>
    %c0_14 = arith.constant 0 : index
    %c0_15 = arith.constant 0 : index
    %24 = vector.load %arg6[%c0_14, %c0_15] : memref<128x128xbf16, #tpu.memory_space<vmem>>, vector<128x128xbf16>
    %cst_16 = arith.constant dense<0.000000e+00> : vector<8x128xf32>
    %25 = tpu.matmul %23, %24, %cst_16 {dimension_numbers = #tpu.dot_dimension_numbers<[1], [0], [0], [1], [0, 0, 1, 1], [], []>} : vector<8x128xbf16>, vector<128x128xbf16>, vector<8x128xf32> -> vector<8x128xf32>
    %c0_17 = arith.constant 0 : index
    %c0_18 = arith.constant 0 : index
    %26 = vector.load %arg7[%c0_17, %c0_18] : memref<1x128xf32, #tpu.memory_space<vmem>>, vector<1x128xf32>
    %27 = vector.broadcast %26 : vector<1x128xf32> to vector<8x128xf32>
    %28 = arith.addf %25, %27 : vector<8x128xf32>
    %cst_19 = arith.constant 0.000000e+00 : f32
    %29 = vector.broadcast %cst_19 : f32 to vector<8x128xf32>
    %30 = arith.cmpf ogt, %28, %29 : vector<8x128xf32>
    %cst_20 = arith.constant 2.000000e-01 : f32
    %31 = vector.broadcast %cst_20 : f32 to vector<8x128xf32>
    %32 = arith.mulf %31, %28 : vector<8x128xf32>
    %33 = arith.select %30, %28, %32 : vector<8x128xi1>, vector<8x128xf32>
    %c0_21 = arith.constant 0 : index
    %c0_22 = arith.constant 0 : index
    %34 = vector.load %arg8[%c0_21, %c0_22] : memref<1x128xf32, #tpu.memory_space<vmem>>, vector<1x128xf32>
    %35 = vector.broadcast %34 : vector<1x128xf32> to vector<8x128xf32>
    %36 = arith.mulf %33, %35 : vector<8x128xf32>
    %cst_23 = arith.constant dense<0.000000e+00> : vector<8xf32>
    %37 = vector.multi_reduction <add>, %36, %cst_23 [1] : vector<8x128xf32> to vector<8xf32>
    %38 = vector.shape_cast %37 : vector<8xf32> to vector<8x1xf32>
    %c0_24 = arith.constant 0 : index
    %c0_25 = arith.constant 0 : index
    %39 = vector.load %arg9[%c0_24, %c0_25] : memref<1x1xf32, #tpu.memory_space<vmem>>, vector<1x1xf32>
    %40 = vector.broadcast %39 : vector<1x1xf32> to vector<8x1xf32>
    %41 = arith.addf %38, %40 : vector<8x1xf32>
    %cst_26 = arith.constant 0.000000e+00 : f32
    %42 = vector.broadcast %cst_26 : f32 to vector<8x1xf32>
    %43 = arith.subf %42, %41 : vector<8x1xf32>
    %44 = math.exp %43 : vector<8x1xf32>
    %cst_27 = arith.constant 1.000000e+00 : f32
    %45 = vector.broadcast %cst_27 : f32 to vector<8x1xf32>
    %46 = arith.addf %45, %44 : vector<8x1xf32>
    %cst_28 = arith.constant 1.000000e+00 : f32
    %47 = vector.broadcast %cst_28 : f32 to vector<8x1xf32>
    %48 = arith.divf %47, %46 : vector<8x1xf32>
    %c0_29 = arith.constant 0 : index
    %c0_30 = arith.constant 0 : index
    %49 = vector.load %arg10[%c0_29, %c0_30] : memref<8x1xf32, #tpu.memory_space<vmem>>, vector<8x1xf32>
    tpu.vector_store %arg10[%c0_29, %c0_30], %48 {strides = array<i32>} : memref<8x1xf32, #tpu.memory_space<vmem>>, vector<8x1xf32>,
    return
  }
  func.func @transform_0(%arg0: i32) -> (i32, i32) {
    %c0_i32 = arith.constant 0 : i32
    %c0_i32_0 = arith.constant 0 : i32
    return %arg0, %c0_i32 : i32, i32
  }
  func.func @transform_1(%arg0: i32) -> (i32, i32) {
    %c0_i32 = arith.constant 0 : i32
    %c0_i32_0 = arith.constant 0 : i32
    %c0_i32_1 = arith.constant 0 : i32
    return %c0_i32, %c0_i32_0 : i32, i32
  }
  func.func @transform_2(%arg0: i32) -> (i32, i32) {
    %c0_i32 = arith.constant 0 : i32
    %c0_i32_0 = arith.constant 0 : i32
    %c0_i32_1 = arith.constant 0 : i32
    return %c0_i32, %c0_i32_0 : i32, i32
  }
  func.func @transform_3(%arg0: i32) -> (i32, i32) {
    %c0_i32 = arith.constant 0 : i32
    %c0_i32_0 = arith.constant 0 : i32
    %c0_i32_1 = arith.constant 0 : i32
    return %c0_i32, %c0_i32_0 : i32, i32
  }
  func.func @transform_4(%arg0: i32) -> (i32, i32) {
    %c0_i32 = arith.constant 0 : i32
    %c0_i32_0 = arith.constant 0 : i32
    %c0_i32_1 = arith.constant 0 : i32
    return %c0_i32, %c0_i32_0 : i32, i32
  }
  func.func @transform_5(%arg0: i32) -> (i32, i32) {
    %c0_i32 = arith.constant 0 : i32
    %c0_i32_0 = arith.constant 0 : i32
    %c0_i32_1 = arith.constant 0 : i32
    return %c0_i32, %c0_i32_0 : i32, i32
  }
  func.func @transform_6(%arg0: i32) -> (i32, i32) {
    %c0_i32 = arith.constant 0 : i32
    %c0_i32_0 = arith.constant 0 : i32
    %c0_i32_1 = arith.constant 0 : i32
    return %c0_i32, %c0_i32_0 : i32, i32
  }
  func.func @transform_7(%arg0: i32) -> (i32, i32) {
    %c0_i32 = arith.constant 0 : i32
    %c0_i32_0 = arith.constant 0 : i32
    %c0_i32_1 = arith.constant 0 : i32
    return %c0_i32, %c0_i32_0 : i32, i32
  }
  func.func @transform_8(%arg0: i32) -> (i32, i32) {
    %c0_i32 = arith.constant 0 : i32
    %c0_i32_0 = arith.constant 0 : i32
    %c0_i32_1 = arith.constant 0 : i32
    return %c0_i32, %c0_i32_0 : i32, i32
  }
  func.func @transform_9(%arg0: i32) -> (i32, i32) {
    %c0_i32 = arith.constant 0 : i32
    %c0_i32_0 = arith.constant 0 : i32
    return %arg0, %c0_i32 : i32, i32
  }
}

</mosaic_0001>

<bundles_post_ra>
// kernel: tpu_custom_call.1
= control target key start
LH: loop header
LB: loop body
LE: loop exit
PB: predicated region body
PF: predicated region fallthrough
CT: control target
= control target key end

     0   :  { %s2051_s0 = inlined_call_operand.hbm [shape: f32[8,1024], index: 0, kind: input, shape index: {}]   ;;  %s2052_s1 = inlined_call_operand.hbm [shape: bf16[1024,256], index: 1, kind: input, shape index: {}]   ;;  %s2053_s2 = inlined_call_operand.vmem [shape: f32[1,256], index: 2, kind: input, shape index: {}]   ;;  %s2054_s3 = inlined_call_operand.hbm [shape: bf16[256,128], index: 3, kind: input, shape index: {}]   ;;  %s2055_s4 = inlined_call_operand.vmem [shape: f32[1,128], index: 4, kind: input, shape index: {}]   ;;  %s2056_s5 = inlined_call_operand.hbm [shape: bf16[128,128], index: 5, kind: input, shape index: {}]   ;;  %s2057_s6 = inlined_call_operand.vmem [shape: f32[1,128], index: 6, kind: input, shape index: {}]   ;;  %s2058_s7 = inlined_call_operand.vmem [shape: f32[1,128], index: 7, kind: input, shape index: {}]   ;;  %s2059_s8 = inlined_call_operand.<no memory space> [shape: f32[1,1], index: 8, kind: input, shape index: {}]   ;;  %s2060_s9 = inlined_call_operand.vmem [shape: f32[8,1], index: 9, kind: output, shape index: {}]  }
   0x1   :  { %v14_v0 = vstv %s2059_s8 }
   0x2   :  { %15 = vst [vmem:[#allocation2] sm:$0x1] %v14_v0 }
   0x3   :  { %16 = vsyncpa [#allocation4], 0 }
   0x4   :  { %17 = vsyncpa [#allocation6], 0 }
   0x5   :  { %18 = vsyncpa [#allocation9], 0  ;;  %s1925_s11 = smov [#allocation5]   ;;  %s1831_s15 = scalar_lea.hbm %s2052_s1, 16384 }
   0x6   :  { %s34_s12 = sshll.u32 %s1925_s11, 4  ;;  %p1832_p0 = scmp.ne.s32.totalorder %s2052_s1, %s1831_s15  ;;  %s35_s12 = int_to_ptr.vmem [resolvable:$true] %s34_s12 }
   0x7   :  { %p1835_p1 = scmp.lt.u32.totalorder %s1831_s15, %s2052_s1 }
   0x9   :  { %p1837_p2 = pnand %p1835_p1, %p1832_p0 }
   0xb   :  { %1840 = shalt.err (!%p1837_p2)
}
   0xc   :  { %s1841_s8 = scalar_lea.vmem %s35_s12, 16384  ;;  %p1846_p4 = scmp.lt.s32.totalorder %s35_s12, %s35_s12 }
   0xd   :  { %p1842_p3 = scmp.ne.s32.totalorder %s35_s12, %s1841_s8  ;;  %p1847_p5 = scmp.lt.s32.totalorder %s1841_s8, %s1841_s8 }
   0xf   :  { %p1848_p6 = por %p1847_p5, %p1846_p4 }
  0x11   :  { %p1849_p7 = pnand %p1848_p6, %p1842_p3 }
  0x13   :  { %1852 = shalt.err (!%p1849_p7)
}
  0x14   :  { %s1926_s20 = smov 128   ;;  %s1927_s21 = smov 8  }
  0x15   :  { %40 = dma.hbm_to_vmem [thread:$0]  %s2052_s1, 16384, %s35_s12, [#allocation6], %s1926_s20, %s1926_s20, %s1927_s21  }
  0x16   :  { %s1928_s24 = smov [#allocation3]   ;;  %s1929_s26 = smov [#allocation7]  }
  0x17   :  { %s25_s25 = sshll.u32 %s1928_s24, 4  ;;  %s48_s27 = sshll.u32 %s1929_s26, 4  ;;  %s26_s25 = int_to_ptr.vmem [resolvable:$true] %s25_s25  ;;  %s49_s27 = int_to_ptr.vmem [resolvable:$true] %s48_s27 }
  0x18   :  { %s1853_s30 = scalar_lea.hbm %s2051_s0, 1024 }
  0x19   :  { %p1854_p8 = scmp.ne.s32.totalorder %s2051_s0, %s1853_s30  ;;  %p1857_p9 = scmp.lt.u32.totalorder %s1853_s30, %s2051_s0 }
  0x1b   :  { %p1859_p10 = pnand %p1857_p9, %p1854_p8 }
  0x1d   :  { %1862 = shalt.err (!%p1859_p10)
}
  0x1e   :  { %s1863_s1 = scalar_lea.vmem %s26_s25, 1024  ;;  %p1868_p12 = scmp.lt.s32.totalorder %s26_s25, %s26_s25 }
  0x1f   :  { %p1864_p11 = scmp.ne.s32.totalorder %s26_s25, %s1863_s1  ;;  %p1869_p13 = scmp.lt.s32.totalorder %s1863_s1, %s1863_s1 }
  0x21   :  { %p1870_p0 = por %p1869_p13, %p1868_p12 }
  0x23   :  { %p1871_p1 = pnand %p1870_p0, %p1864_p11 }
  0x25   :  { %1874 = shalt.err (!%p1871_p1)
}
  0x26   :  { %28 = dma.hbm_to_vmem [thread:$0]  %s2051_s0, 1024, %s26_s25, [#allocation4]  }
  0x27   :  { %s1875_s18 = scalar_lea.hbm %s2054_s3, 2048 }
  0x28   :  { %p1876_p2 = scmp.ne.s32.totalorder %s2054_s3, %s1875_s18  ;;  %p1879_p3 = scmp.lt.u32.totalorder %s1875_s18, %s2054_s3 }
  0x2a   :  { %p1881_p4 = pnand %p1879_p3, %p1876_p2 }
  0x2c   :  { %1884 = shalt.err (!%p1881_p4)
}
  0x2d   :  { %s1885_s22 = scalar_lea.vmem %s49_s27, 2048  ;;  %p1890_p6 = scmp.lt.s32.totalorder %s49_s27, %s49_s27 }
  0x2e   :  { %p1886_p5 = scmp.ne.s32.totalorder %s49_s27, %s1885_s22  ;;  %p1891_p7 = scmp.lt.s32.totalorder %s1885_s22, %s1885_s22 }
  0x30   :  { %p1892_p8 = por %p1891_p7, %p1890_p6 }
  0x32   :  { %p1893_p9 = pnand %p1892_p8, %p1886_p5 }
  0x34   :  { %1896 = shalt.err (!%p1893_p9)
}
  0x35   :  { %s1930_s0 = smov 64   ;;  %s1931_s23 = smov 4  }
  0x36   :  { %54 = dma.hbm_to_vmem [thread:$0]  %s2054_s3, 2048, %s49_s27, [#allocation6], %s1930_s0, %s1930_s0, %s1931_s23  }
  0x37   :  { %s1932_s26 = smov [#allocation8]   ;;  %s1897_s10 = scalar_lea.hbm %s2056_s5, 1024 }
  0x38   :  { %s62_s28 = sshll.u32 %s1932_s26, 4  ;;  %p1898_p10 = scmp.ne.s32.totalorder %s2056_s5, %s1897_s10  ;;  %s63_s28 = int_to_ptr.vmem [resolvable:$true] %s62_s28 }
  0x39   :  { %p1901_p11 = scmp.lt.u32.totalorder %s1897_s10, %s2056_s5 }
  0x3b   :  { %p1903_p12 = pnand %p1901_p11, %p1898_p10 }
  0x3d   :  { %1906 = shalt.err (!%p1903_p12)
}
  0x3e   :  { %s1907_s12 = scalar_lea.vmem %s63_s28, 1024  ;;  %p1912_p0 = scmp.lt.s32.totalorder %s63_s28, %s63_s28 }
  0x3f   :  { %p1908_p13 = scmp.ne.s32.totalorder %s63_s28, %s1907_s12  ;;  %p1913_p1 = scmp.lt.s32.totalorder %s1907_s12, %s1907_s12 }
  0x41   :  { %p1914_p2 = por %p1913_p1, %p1912_p0 }
  0x43   :  { %p1915_p3 = pnand %p1914_p2, %p1908_p13 }
  0x45   :  { %1918 = shalt.err (!%p1915_p3)
}
  0x46   :  { %68 = dma.hbm_to_vmem [thread:$0]  %s2056_s5, 1024, %s63_s28, [#allocation9], %s1930_s0, %s1930_s0, %s1931_s23  }
  0x47   :  { %1919 = dma.done.wait [#allocation4], 1024  }
  0x48   :  { %1920 = vsyncadd [#allocation4], 4294966272 }
  0x49   :  { %1921 = dma.done.wait [#allocation6], 18432  }
  0x4a   :  { %1922 = vsyncadd [#allocation6], 4294948864 }
  0x4b   :  { %1923 = dma.done.wait [#allocation9], 1024  }
  0x4c   :  { %1924 = vsyncadd [#allocation9], 4294966272  ;;  %v1611_v1 = vld [vmem:[#allocation5 + $0x104] ss:$8 sps:$4 sm:$0xff]   ;;  %v1613_v2 = vld [vmem:[#allocation5 + $0x100] ss:$8 sps:$4 sm:$0xff]  }
  0x4d   :  { %925 = vmatprep.subr.bf16.mxu0 %v1611_v1  ;;  %v1614_v3 = vld [vmem:[#allocation5 + $0x114] ss:$8 sps:$4 sm:$0xff]   ;;  %v1616_v4 = vld [vmem:[#allocation5 + $0x110] ss:$8 sps:$4 sm:$0xff]   ;;  %v1617_v5 = vld [vmem:[#allocation5 + $0x124] ss:$8 sps:$4 sm:$0xff]  }
  0x4e   :  { %926 = vmatpush1.bf16.msra.mxu0 %v1613_v2  ;;  %v1619_v6 = vld [vmem:[#allocation5 + $0x120] ss:$8 sps:$4 sm:$0xff]   ;;  %v1620_v7 = vld [vmem:[#allocation5 + $0x134] ss:$8 sps:$4 sm:$0xff]   ;;  %v1622_v8 = vld [vmem:[#allocation5 + $0x130] ss:$8 sps:$4 sm:$0xff]  }
  0x4f   :  { %927 = vmatprep.subr.bf16.mxu0 %v1614_v3  ;;  %v1623_v9 = vld [vmem:[#allocation5 + $0x144] ss:$8 sps:$4 sm:$0xff]   ;;  %v1625_v10 = vld [vmem:[#allocation5 + $0x140] ss:$8 sps:$4 sm:$0xff]   ;;  %v1626_v11 = vld [vmem:[#allocation5 + $0x154] ss:$8 sps:$4 sm:$0xff]  }
  0x50   :  { %v1628_v12 = vld [vmem:[#allocation5 + $0x150] ss:$8 sps:$4 sm:$0xff]   ;;  %v1629_v13 = vld [vmem:[#allocation5 + $0x164] ss:$8 sps:$4 sm:$0xff]   ;;  %v1631_v16 = vld [vmem:[#allocation5 + $0x160] ss:$8 sps:$4 sm:$0xff]  }
  0x51   :  { %v91_v14 = vld [vmem:[#allocation3 + $0x18] sm:$0xff]  ;;  %v1635_v19 = vld [vmem:[#allocation5 + $0x184] ss:$8 sps:$4 sm:$0xff]   ;;  %v1637_v20 = vld [vmem:[#allocation5 + $0x180] ss:$8 sps:$4 sm:$0xff]   ;;  %vm1934_vm2 = vmmov 0  }
  0x52   :  { %928 = vmatpush1.bf16.msra.mxu0 %v1616_v4  ;;  %v99_v15 = vpack.c.bf16 %v91_v14, %v91_v14  ;;  %v1632_v17 = vld [vmem:[#allocation5 + $0x174] ss:$8 sps:$4 sm:$0xff]   ;;  %v1634_v18 = vld [vmem:[#allocation5 + $0x170] ss:$8 sps:$4 sm:$0xff]   ;;  %v1641_v23 = vld [vmem:[#allocation5 + $0x1a4] ss:$8 sps:$4 sm:$0xff]  }
  0x53   :  { %929 = vmatprep.subr.bf16.mxu0 %v1617_v5  ;;  %v1638_v21 = vld [vmem:[#allocation5 + $0x194] ss:$8 sps:$4 sm:$0xff]   ;;  %v1640_v22 = vld [vmem:[#allocation5 + $0x190] ss:$8 sps:$4 sm:$0xff]   ;;  %v1643_v24 = vld [vmem:[#allocation5 + $0x1a0] ss:$8 sps:$4 sm:$0xff]  }
  0x54   :  { %957 = vmatprep.mubr.bf16.mxu0 %v99_v15  ;;  %v1644_v25 = vld [vmem:[#allocation5 + $0x1b4] ss:$8 sps:$4 sm:$0xff]   ;;  %v1646_v26 = vld [vmem:[#allocation5 + $0x1b0] ss:$8 sps:$4 sm:$0xff]   ;;  %v1704_v27 = vld [vmem:[#allocation5 + $0x4] ss:$8 sps:$4 sm:$0xff]  }
  0x55   :  { %v1706_v28 = vld [vmem:[#allocation5] ss:$8 sps:$4 sm:$0xff]   ;;  %v1647_v29 = vld [vmem:[#allocation5 + $0x1c4] ss:$8 sps:$4 sm:$0xff]   ;;  %884 = vmatprep.subr.bf16.mxu1 %v1704_v27  ;;  %v1710_v30 = vld [vmem:[#allocation5 + $0x14] ss:$8 sps:$4 sm:$0xff]  }
  0x56   :  { %930 = vmatpush1.bf16.msra.mxu0 %v1619_v6  ;;  %885 = vmatpush1.bf16.msra.mxu1 %v1706_v28  ;;  %v1712_v31 = vld [vmem:[#allocation5 + $0x10] ss:$8 sps:$4 sm:$0xff]   ;;  %v1649_v32 = vld [vmem:[#allocation5 + $0x1c0] ss:$8 sps:$4 sm:$0xff]   ;;  %v1650_v33 = vld [vmem:[#allocation5 + $0x1d4] ss:$8 sps:$4 sm:$0xff]  }
  0x57   :  { %931 = vmatprep.subr.bf16.mxu0 %v1620_v7  ;;  %886 = vmatprep.subr.bf16.mxu1 %v1710_v30  ;;  %v1716_v34 = vld [vmem:[#allocation5 + $0x24] ss:$8 sps:$4 sm:$0xff]   ;;  %v1718_v35 = vld [vmem:[#allocation5 + $0x20] ss:$8 sps:$4 sm:$0xff]   ;;  %v1652_v36 = vld [vmem:[#allocation5 + $0x1d0] ss:$8 sps:$4 sm:$0xff]  }
  0x58   :  { %v1722_v37 = vld [vmem:[#allocation5 + $0x34] ss:$8 sps:$4 sm:$0xff]   ;;  %v1653_v38 = vld [vmem:[#allocation5 + $0x1e4] ss:$8 sps:$4 sm:$0xff]   ;;  %v1724_v39 = vld [vmem:[#allocation5 + $0x30] ss:$8 sps:$4 sm:$0xff]  }
  0x59   :  { %v1728_v40 = vld [vmem:[#allocation5 + $0x44] ss:$8 sps:$4 sm:$0xff]   ;;  %v1655_v41 = vld [vmem:[#allocation5 + $0x1e0] ss:$8 sps:$4 sm:$0xff]   ;;  %v1656_v42 = vld [vmem:[#allocation5 + $0x1f4] ss:$8 sps:$4 sm:$0xff]  }
  0x5a   :  { %932 = vmatpush1.bf16.msra.mxu0 %v1622_v8  ;;  %887 = vmatpush1.bf16.msra.mxu1 %v1712_v31  ;;  %v1730_v43 = vld [vmem:[#allocation5 + $0x40] ss:$8 sps:$4 sm:$0xff]   ;;  %v1658_v44 = vld [vmem:[#allocation5 + $0x1f0] ss:$8 sps:$4 sm:$0xff]   ;;  %v1734_v45 = vld [vmem:[#allocation5 + $0x54] ss:$8 sps:$4 sm:$0xff]  }
  0x5b   :  { %933 = vmatprep.subr.bf16.mxu0 %v1623_v9  ;;  %888 = vmatprep.subr.bf16.mxu1 %v1716_v34  ;;  %v1661_v46 = vld [vmem:[#allocation5 + $0x204] ss:$8 sps:$4 sm:$0xff]   ;;  %v90_v47 = vld [vmem:[#allocation3 + $0x10] sm:$0xff]  ;;  %v1659_v52 = vld [vmem:[#allocation5 + $0x200] ss:$8 sps:$4 sm:$0xff]   ;;  %vm1373_vm5 = vcmask 7168  }
  0x5c   :  { %v93_v48 = vld [vmem:[#allocation3 + $0x28] sm:$0xff]  ;;  %v1736_v49 = vld [vmem:[#allocation5 + $0x50] ss:$8 sps:$4 sm:$0xff]   ;;  %v98_v50 = vpack.c.bf16 %v90_v47, %v90_v47  ;;  %v1664_v54 = vld [vmem:[#allocation5 + $0x214] ss:$8 sps:$4 sm:$0xff]  }
  0x5d   :  { %v1740_v51 = vld [vmem:[#allocation5 + $0x64] ss:$8 sps:$4 sm:$0xff]   ;;  %v101_v53 = vpack.c.bf16 %v93_v48, %v93_v48  ;;  %v1742_v55 = vld [vmem:[#allocation5 + $0x60] ss:$8 sps:$4 sm:$0xff]   ;;  %v1746_v56 = vld [vmem:[#allocation5 + $0x74] ss:$8 sps:$4 sm:$0xff]  }
  0x5e   :  { %934 = vmatpush1.bf16.msra.mxu0 %v1625_v10  ;;  %889 = vmatpush1.bf16.msra.mxu1 %v1718_v35  ;;  %v1662_v57 = vld [vmem:[#allocation5 + $0x210] ss:$8 sps:$4 sm:$0xff]   ;;  %v1667_v58 = vld [vmem:[#allocation5 + $0x224] ss:$8 sps:$4 sm:$0xff]   ;;  %v1665_v61 = vld [vmem:[#allocation5 + $0x220] ss:$8 sps:$4 sm:$0xff]  }
  0x5f   :  { %935 = vmatprep.subr.bf16.mxu0 %v1626_v11  ;;  %890 = vmatprep.subr.bf16.mxu1 %v1722_v37  ;;  %v1748_v59 = vld [vmem:[#allocation5 + $0x70] ss:$8 sps:$4 sm:$0xff]   ;;  %v1752_v60 = vld [vmem:[#allocation5 + $0x84] ss:$8 sps:$4 sm:$0xff]   ;;  %v1670_v62 = vld [vmem:[#allocation5 + $0x234] ss:$8 sps:$4 sm:$0xff]  }
  0x60   :  { %v1754_v63 = vld [vmem:[#allocation5 + $0x80] ss:$8 sps:$4 sm:$0xff]   ;;  %v1758_v0 = vld [vmem:[#allocation5 + $0x94] ss:$8 sps:$4 sm:$0xff]   ;;  %v1668_v1 = vld [vmem:[#allocation5 + $0x230] ss:$8 sps:$4 sm:$0xff]  }
  0x61   :  { %v1673_v2 = vld [vmem:[#allocation5 + $0x244] ss:$8 sps:$4 sm:$0xff]   ;;  %v1760_v3 = vld [vmem:[#allocation5 + $0x90] ss:$8 sps:$4 sm:$0xff]   ;;  %v1671_v5 = vld [vmem:[#allocation5 + $0x240] ss:$8 sps:$4 sm:$0xff]  }
  0x62   :  { %936 = vmatpush1.bf16.msra.mxu0 %v1628_v12  ;;  %891 = vmatpush1.bf16.msra.mxu1 %v1724_v39  ;;  %v1764_v4 = vld [vmem:[#allocation5 + $0xa4] ss:$8 sps:$4 sm:$0xff]   ;;  %v1676_v6 = vld [vmem:[#allocation5 + $0x254] ss:$8 sps:$4 sm:$0xff]   ;;  %v1766_v7 = vld [vmem:[#allocation5 + $0xa0] ss:$8 sps:$4 sm:$0xff]  }
  0x63   :  { %937 = vmatprep.subr.bf16.mxu0 %v1629_v13  ;;  %892 = vmatprep.subr.bf16.mxu1 %v1728_v40  ;;  %v1770_v8 = vld [vmem:[#allocation5 + $0xb4] ss:$8 sps:$4 sm:$0xff]   ;;  %v1674_v9 = vld [vmem:[#allocation5 + $0x250] ss:$8 sps:$4 sm:$0xff]   ;;  %v1679_v10 = vld [vmem:[#allocation5 + $0x264] ss:$8 sps:$4 sm:$0xff]  }
  0x64   :  { %v1772_v11 = vld [vmem:[#allocation5 + $0xb0] ss:$8 sps:$4 sm:$0xff]   ;;  %v89_v12 = vld [vmem:[#allocation3 + $0x8] sm:$0xff]  ;;  %v1794_v27 = vld [vmem:[#allocation5 + $0xf4] ss:$8 sps:$4 sm:$0xff]  }
  0x65   :  { %v1776_v13 = vld [vmem:[#allocation5 + $0xc4] ss:$8 sps:$4 sm:$0xff]   ;;  %v97_v14 = vpack.c.bf16 %v89_v12, %v89_v12  ;;  %v1677_v15 = vld [vmem:[#allocation5 + $0x260] ss:$8 sps:$4 sm:$0xff]   ;;  %v1692_v37 = vld [vmem:[#allocation5 + $0x2b0] ss:$8 sps:$4 sm:$0xff]  }
  0x66   :  { %938 = vmatpush1.bf16.msra.mxu0 %v1631_v16  ;;  %893 = vmatpush1.bf16.msra.mxu1 %v1730_v43  ;;  %v1682_v16 = vld [vmem:[#allocation5 + $0x274] ss:$8 sps:$4 sm:$0xff]   ;;  %v1691_v28 = vld [vmem:[#allocation5 + $0x2a4] ss:$8 sps:$4 sm:$0xff]  }
  0x67   :  { %939 = vmatprep.subr.bf16.mxu0 %v1632_v17  ;;  %894 = vmatprep.subr.bf16.mxu1 %v1734_v45  ;;  %v1778_v17 = vld [vmem:[#allocation5 + $0xc0] ss:$8 sps:$4 sm:$0xff]   ;;  %v1807_v40 = vld [vmem:[#allocation7 + $0x50] sm:$0xff]   ;;  %v1810_v47 = vld [vmem:[#allocation7 + $0x18] sm:$0xff]  }
  0x68   :  { %916 = vmatprep.mubr.bf16.mxu1 %v97_v14  ;;  %v88_v30 = vld [vmem:[#allocation3] sm:$0xff]  ;;  %v1806_v39 = vld [vmem:[#allocation7 + $0x8] sm:$0xff]   ;;  %v1808_v43 = vld [vmem:[#allocation7 + $0x10] sm:$0xff]  }
  0x69   :  { %v1803_v31 = vld [vmem:[#allocation7 + $0x40] sm:$0xff]   ;;  %v96_v35 = vpack.c.bf16 %v88_v30, %v88_v30  ;;  %v1698_v45 = vld [vmem:[#allocation5 + $0x2d0] ss:$8 sps:$4 sm:$0xff]   ;;  %v1781_v14 = vld [vmem:[#allocation5 + $0x3b4] ss:$8 sps:$4 sm:$0xff]  }
  0x6a   :  { %940 = vmatpush1.bf16.msra.mxu0 %v1634_v18  ;;  %895 = vmatpush1.bf16.msra.mxu1 %v1736_v49  ;;  %v1782_v18 = vld [vmem:[#allocation5 + $0xd4] ss:$8 sps:$4 sm:$0xff]   ;;  %v1804_v34 = vld [vmem:[#allocation7] sm:$0xff]  }
  0x6b   :  { %941 = vmatprep.subr.bf16.mxu0 %v1635_v19  ;;  %896 = vmatprep.subr.bf16.mxu1 %v1740_v51  ;;  %v1680_v19 = vld [vmem:[#allocation5 + $0x270] ss:$8 sps:$4 sm:$0xff]   ;;  %v1811_v48 = vld [vmem:[#allocation7 + $0x60] sm:$0xff]  }
  0x6c   :  { %v1701_v49 = vld [vmem:[#allocation5 + $0x2e0] ss:$8 sps:$4 sm:$0xff]   ;;  %v1707_v51 = vld [vmem:[#allocation5 + $0x2f0] ss:$8 sps:$4 sm:$0xff]   ;;  %v1775_v12 = vld [vmem:[#allocation5 + $0x3a4] ss:$8 sps:$4 sm:$0xff]  }
  0x6d   :  { %v1816_v30 = vld [vmem:[#allocation7 + $0x30] sm:$0xff]  }
  0x6e   :  { %942 = vmatpush1.bf16.msra.mxu0 %v1637_v20  ;;  %897 = vmatpush1.bf16.msra.mxu1 %v1742_v55  ;;  %v1685_v20 = vld [vmem:[#allocation5 + $0x284] ss:$8 sps:$4 sm:$0xff]  }
  0x6f   :  { %943 = vmatprep.subr.bf16.mxu0 %v1638_v21  ;;  %898 = vmatprep.subr.bf16.mxu1 %v1746_v56  ;;  %v1683_v21 = vld [vmem:[#allocation5 + $0x280] ss:$8 sps:$4 sm:$0xff]  }
  0x70   :  { %v1713_v56 = vld [vmem:[#allocation5 + $0x300] ss:$8 sps:$4 sm:$0xff]  }
  0x72   :  { %944 = vmatpush1.bf16.msra.mxu0 %v1640_v22  ;;  %899 = vmatpush1.bf16.msra.mxu1 %v1748_v59  ;;  %v1784_v22 = vld [vmem:[#allocation5 + $0xd0] ss:$8 sps:$4 sm:$0xff]  }
  0x73   :  { %945 = vmatprep.subr.bf16.mxu0 %v1641_v23  ;;  %900 = vmatprep.subr.bf16.mxu1 %v1752_v60  ;;  %v1788_v23 = vld [vmem:[#allocation5 + $0xe4] ss:$8 sps:$4 sm:$0xff]   ;;  %v1719_v59 = vld [vmem:[#allocation5 + $0x310] ss:$8 sps:$4 sm:$0xff]  }
  0x74   :  { %v1727_v60 = vld [vmem:[#allocation5 + $0x324] ss:$8 sps:$4 sm:$0xff]  }
  0x76   :  { %946 = vmatpush1.bf16.msra.mxu0 %v1643_v24  ;;  %901 = vmatpush1.bf16.msra.mxu1 %v1754_v63  ;;  %v1688_v24 = vld [vmem:[#allocation5 + $0x294] ss:$8 sps:$4 sm:$0xff]   ;;  %v1731_v63 = vld [vmem:[#allocation5 + $0x330] ss:$8 sps:$4 sm:$0xff]  }
  0x77   :  { %947 = vmatprep.subr.bf16.mxu0 %v1644_v25  ;;  %902 = vmatprep.subr.bf16.mxu1 %v1758_v0  ;;  %v1790_v25 = vld [vmem:[#allocation5 + $0xe0] ss:$8 sps:$4 sm:$0xff]   ;;  %v1739_v0 = vld [vmem:[#allocation5 + $0x344] ss:$8 sps:$4 sm:$0xff]  }
  0x7a   :  { %948 = vmatpush1.bf16.msra.mxu0 %v1646_v26  ;;  %903 = vmatpush1.bf16.msra.mxu1 %v1760_v3  ;;  %v1686_v26 = vld [vmem:[#allocation5 + $0x290] ss:$8 sps:$4 sm:$0xff]  }
  0x7b   :  { %949 = vmatprep.subr.bf16.mxu0 %v1647_v29  ;;  %904 = vmatprep.subr.bf16.mxu1 %v1764_v4  ;;  %v1796_v29 = vld [vmem:[#allocation5 + $0xf0] ss:$8 sps:$4 sm:$0xff]   ;;  %v1751_v4 = vld [vmem:[#allocation5 + $0x364] ss:$8 sps:$4 sm:$0xff]  }
  0x7c   :  { %v1743_v3 = vld [vmem:[#allocation5 + $0x350] ss:$8 sps:$4 sm:$0xff]  }
  0x7e   :  { %950 = vmatpush1.bf16.msra.mxu0 %v1649_v32  ;;  %905 = vmatpush1.bf16.msra.mxu1 %v1766_v7  ;;  %v1689_v32 = vld [vmem:[#allocation5 + $0x2a0] ss:$8 sps:$4 sm:$0xff]   ;;  %v1755_v7 = vld [vmem:[#allocation5 + $0x370] ss:$8 sps:$4 sm:$0xff]  }
  0x7f   :  { %951 = vmatprep.subr.bf16.mxu0 %v1650_v33  ;;  %906 = vmatprep.subr.bf16.mxu1 %v1770_v8  ;;  %v1694_v33 = vld [vmem:[#allocation5 + $0x2b4] ss:$8 sps:$4 sm:$0xff]   ;;  %v1763_v8 = vld [vmem:[#allocation5 + $0x384] ss:$8 sps:$4 sm:$0xff]  }
  0x82   :  { %952 = vmatpush1.bf16.msra.mxu0 %v1652_v36  ;;  %907 = vmatpush1.bf16.msra.mxu1 %v1772_v11  ;;  %v1805_v36 = vld [vmem:[#allocation7 + $0x48] sm:$0xff]   ;;  %v1767_v11 = vld [vmem:[#allocation5 + $0x390] ss:$8 sps:$4 sm:$0xff]  }
  0x83   :  { %953 = vmatprep.subr.bf16.mxu0 %v1653_v38  ;;  %908 = vmatprep.subr.bf16.mxu1 %v1776_v13  ;;  %v1697_v38 = vld [vmem:[#allocation5 + $0x2c4] ss:$8 sps:$4 sm:$0xff]   ;;  %v1773_v13 = vld [vmem:[#allocation5 + $0x3a0] ss:$8 sps:$4 sm:$0xff]  }
  0x86   :  { %954 = vmatpush1.bf16.msra.mxu0 %v1655_v41  ;;  %909 = vmatpush1.bf16.msra.mxu1 %v1778_v17  ;;  %v1695_v41 = vld [vmem:[#allocation5 + $0x2c0] ss:$8 sps:$4 sm:$0xff]  }
  0x87   :  { %955 = vmatprep.subr.bf16.mxu0 %v1656_v42  ;;  %910 = vmatprep.subr.bf16.mxu1 %v1782_v18  ;;  %v1700_v42 = vld [vmem:[#allocation5 + $0x2d4] ss:$8 sps:$4 sm:$0xff]   ;;  %v1785_v17 = vld [vmem:[#allocation5 + $0x3c0] ss:$8 sps:$4 sm:$0xff]  }
  0x88   :  { %v1793_v18 = vld [vmem:[#allocation5 + $0x3d4] ss:$8 sps:$4 sm:$0xff]  }
  0x8a   :  { %956 = vmatpush1.bf16.msra.mxu0 %v1658_v44  ;;  %911 = vmatpush1.bf16.msra.mxu1 %v1784_v22  ;;  %v1809_v44 = vld [vmem:[#allocation7 + $0x58] sm:$0xff]  }
  0x8b   :  { %966 = vmatprep.subr.bf16.mxu0 %v1661_v46  ;;  %912 = vmatprep.subr.bf16.mxu1 %v1788_v23  ;;  %v1703_v46 = vld [vmem:[#allocation5 + $0x2e4] ss:$8 sps:$4 sm:$0xff]   ;;  %v1802_v22 = vld [vmem:[#allocation5 + $0x3f4] ss:$8 sps:$4 sm:$0xff]   ;;  %v1800_v23 = vld [vmem:[#allocation5 + $0x3f0] ss:$8 sps:$4 sm:$0xff]  }
  0x8d   :  { %958 = vmatmul.mubr.bf16.vlgmr.msra.gmra.mrb[0].mxu0 %v98_v50  ;;  %v1709_v50 = vld [vmem:[#allocation5 + $0x2f4] ss:$8 sps:$4 sm:$0xff]  }
  0x8e   :  { %967 = vmatpush1.bf16.msra.mxu0 %v1659_v52  ;;  %998 = vmatprep.mubr.bf16.mxu0 %v101_v53  ;;  %v92_v52 = vld [vmem:[#allocation3 + $0x20] sm:$0xff] }
  0x8f   :  { %968 = vmatprep.subr.bf16.mxu0 %v1664_v54  ;;  %913 = vmatpush1.bf16.msra.mxu1 %v1790_v25  ;;  %v1715_v53 = vld [vmem:[#allocation5 + $0x304] ss:$8 sps:$4 sm:$0xff]   ;;  %v95_v54 = vld [vmem:[#allocation3 + $0x38] sm:$0xff]  ;;  %v100_v55 = vpack.c.bf16 %v92_v52, %v92_v52 }
  0x90   :  { %914 = vmatprep.subr.bf16.mxu1 %v1794_v27  ;;  %v1813_v27 = vld [vmem:[#allocation7 + $0x68] sm:$0xff]  }
  0x92   :  { %969 = vmatpush1.bf16.msra.mxu0 %v1662_v57  ;;  %v103_v57 = vpack.c.bf16 %v95_v54, %v95_v54 }
  0x93   :  { %970 = vmatprep.subr.bf16.mxu0 %v1667_v58  ;;  %915 = vmatpush1.bf16.msra.mxu1 %v1796_v29  ;;  %v1721_v58 = vld [vmem:[#allocation5 + $0x314] ss:$8 sps:$4 sm:$0xff]  }
  0x94   :  { %1538 = vmatprep.subr.bf16.mxu1 %v1803_v31  ;;  %v1815_v29 = vld [vmem:[#allocation7 + $0x70] sm:$0xff]   ;;  %v1817_v31 = vld [vmem:[#allocation7 + $0x78] sm:$0xff]  }
  0x96   :  { %971 = vmatpush1.bf16.msra.mxu0 %v1665_v61  ;;  %917 = vmatmul.mubr.bf16.vlgmr.msra.gmra.mrb[0].mxu1 %v96_v35  ;;  %v1725_v61 = vld [vmem:[#allocation5 + $0x320] ss:$8 sps:$4 sm:$0xff]  }
  0x97   :  { %972 = vmatprep.subr.bf16.mxu0 %v1670_v62  ;;  %1539 = vmatpush3.bf16.msra.mxu1 %v1804_v34  ;;  %v1733_v62 = vld [vmem:[#allocation5 + $0x334] ss:$8 sps:$4 sm:$0xff]  }
  0x98   :  { %1540 = vmatprep.subr.bf16.mxu1 %v1805_v36 }
  0x9a   :  { %973 = vmatpush1.bf16.msra.mxu0 %v1668_v1  ;;  %v1737_v1 = vld [vmem:[#allocation5 + $0x340] ss:$8 sps:$4 sm:$0xff]  }
  0x9b   :  { %974 = vmatprep.subr.bf16.mxu0 %v1673_v2  ;;  %1541 = vmatpush3.bf16.msra.mxu1 %v1806_v39  ;;  %v1745_v2 = vld [vmem:[#allocation5 + $0x354] ss:$8 sps:$4 sm:$0xff]  }
  0x9c   :  { %1542 = vmatprep.subr.bf16.mxu1 %v1807_v40 }
  0x9e   :  { %975 = vmatpush1.bf16.msra.mxu0 %v1671_v5  ;;  %v1749_v5 = vld [vmem:[#allocation5 + $0x360] ss:$8 sps:$4 sm:$0xff]  }
  0x9f   :  { %976 = vmatprep.subr.bf16.mxu0 %v1676_v6  ;;  %1543 = vmatpush3.bf16.msra.mxu1 %v1808_v43  ;;  %v1757_v6 = vld [vmem:[#allocation5 + $0x374] ss:$8 sps:$4 sm:$0xff]  }
  0xa0   :  { %1544 = vmatprep.subr.bf16.mxu1 %v1809_v44 }
  0xa2   :  { %977 = vmatpush1.bf16.msra.mxu0 %v1674_v9  ;;  %v1761_v9 = vld [vmem:[#allocation5 + $0x380] ss:$8 sps:$4 sm:$0xff]  }
  0xa3   :  { %978 = vmatprep.subr.bf16.mxu0 %v1679_v10  ;;  %1545 = vmatpush3.bf16.msra.mxu1 %v1810_v47  ;;  %v1769_v10 = vld [vmem:[#allocation5 + $0x394] ss:$8 sps:$4 sm:$0xff]  }
  0xa4   :  { %1546 = vmatprep.subr.bf16.mxu1 %v1811_v48 }
  0xa6   :  { %979 = vmatpush1.bf16.msra.mxu0 %v1677_v15  ;;  %v1779_v15 = vld [vmem:[#allocation5 + $0x3b0] ss:$8 sps:$4 sm:$0xff]  }
  0xa7   :  { %980 = vmatprep.subr.bf16.mxu0 %v1682_v16  ;;  %v1787_v16 = vld [vmem:[#allocation5 + $0x3c4] ss:$8 sps:$4 sm:$0xff]  }
  0xaa   :  { %981 = vmatpush1.bf16.msra.mxu0 %v1680_v19  ;;  %v1791_v19 = vld [vmem:[#allocation5 + $0x3d0] ss:$8 sps:$4 sm:$0xff]  }
  0xab   :  { %982 = vmatprep.subr.bf16.mxu0 %v1685_v20  ;;  %v1799_v20 = vld [vmem:[#allocation5 + $0x3e4] ss:$8 sps:$4 sm:$0xff]  }
  0xae   :  { %983 = vmatpush1.bf16.msra.mxu0 %v1683_v21  ;;  %v1797_v21 = vld [vmem:[#allocation5 + $0x3e0] ss:$8 sps:$4 sm:$0xff]  }
  0xaf   :  { %984 = vmatprep.subr.bf16.mxu0 %v1688_v24  ;;  %v94_v24 = vld [vmem:[#allocation3 + $0x30] sm:$0xff] }
  0xb0   :  { %v102_v25 = vpack.c.bf16 %v94_v24, %v94_v24 }
  0xb2   :  { %985 = vmatpush1.bf16.msra.mxu0 %v1686_v26  ;;  %v1812_v26 = vld [vmem:[#allocation7 + $0x20] sm:$0xff]  }
  0xb3   :  { %986 = vmatprep.subr.bf16.mxu0 %v1691_v28  ;;  %1547 = vmatpush3.bf16.msra.mxu1 %v1812_v26  ;;  %v1814_v28 = vld [vmem:[#allocation7 + $0x28] sm:$0xff]  }
  0xb4   :  { %1548 = vmatprep.subr.bf16.mxu1 %v1813_v27 }
  0xb6   :  { %987 = vmatpush1.bf16.msra.mxu0 %v1689_v32  ;;  %v1818_v32 = vld [vmem:[#allocation7 + $0x38] sm:$0xff]  }
  0xb7   :  { %988 = vmatprep.subr.bf16.mxu0 %v1694_v33  ;;  %1549 = vmatpush3.bf16.msra.mxu1 %v1814_v28  ;;  %v1933_v33 = vmov 0.0  }
  0xb8   :  { %1550 = vmatprep.subr.bf16.mxu1 %v1815_v29 }
  0xba   :  { %989 = vmatpush1.bf16.msra.mxu0 %v1692_v37 }
  0xbb   :  { %990 = vmatprep.subr.bf16.mxu0 %v1697_v38  ;;  %1551 = vmatpush3.bf16.msra.mxu1 %v1816_v30  ;;  %v234_v38 = vlaneseq }
  0xbc   :  { %1552 = vmatprep.subr.bf16.mxu1 %v1817_v31 }
  0xbd   :  { %v235_v39 = vshrl.u32 %v234_v38, 7 }
  0xbe   :  { %991 = vmatpush1.bf16.msra.mxu0 %v1695_v41  ;;  %v232_v41 = vld [vmem:[%s2053_s2] sm:$0x3] }
  0xbf   :  { %992 = vmatprep.subr.bf16.mxu0 %v1700_v42  ;;  %1553 = vmatpush3.bf16.msra.mxu1 %v1818_v32  ;;  %v236_v40 = vsub.s32 0, %v235_v39  ;;  %v240_v42 = vsub.s32 1, %v235_v39 }
  0xc0   :  { %1569 = vmatprep.subr.bf16.mxu1 %v1933_v33 }
  0xc1   :  { %v237_v43 = vrot.slane %v232_v41, %v236_v40  ;;  %v241_v44 = vrot.slane %v232_v41, %v240_v42 }
  0xc2   :  { %993 = vmatpush1.bf16.msra.mxu0 %v1698_v45 }
  0xc3   :  { %994 = vmatprep.subr.bf16.mxu0 %v1703_v46 }
  0xc6   :  { %995 = vmatpush1.bf16.msra.mxu0 %v1701_v49 }
  0xc7   :  { %996 = vmatprep.subr.bf16.mxu0 %v1709_v50 }
  0xca   :  { %997 = vmatpush1.bf16.msra.mxu0 %v1707_v51 }
  0xcb   :  { %1007 = vmatprep.subr.bf16.mxu0 %v1715_v53 }
  0xcd   :  { %999 = vmatmul.mubr.bf16.vlgmr.msra.gmra.mrb[0].mxu0 %v100_v55 }
  0xce   :  { %1008 = vmatpush1.bf16.msra.mxu0 %v1713_v56  ;;  %1039 = vmatprep.mubr.bf16.mxu0 %v103_v57 }
  0xcf   :  { %1009 = vmatprep.subr.bf16.mxu0 %v1721_v58  ;;  %v1819_v58 = vld [vmem:[#allocation8] sm:$0xff]  }
  0xd2   :  { %1010 = vmatpush1.bf16.msra.mxu0 %v1719_v59 }
  0xd3   :  { %1011 = vmatprep.subr.bf16.mxu0 %v1727_v60  ;;  %v1820_v60 = vld [vmem:[#allocation8 + $0x8] sm:$0xff]  }
  0xd6   :  { %1012 = vmatpush1.bf16.msra.mxu0 %v1725_v61  ;;  %v1821_v61 = vld [vmem:[#allocation8 + $0x10] sm:$0xff]  }
  0xd7   :  { %1013 = vmatprep.subr.bf16.mxu0 %v1733_v62  ;;  %v1822_v62 = vld [vmem:[#allocation8 + $0x18] sm:$0xff]  }
  0xda   :  { %1014 = vmatpush1.bf16.msra.mxu0 %v1731_v63  ;;  %v1823_v63 = vld [vmem:[#allocation8 + $0x20] sm:$0xff]  }
  0xdb   :  { %1015 = vmatprep.subr.bf16.mxu0 %v1739_v0  ;;  %v1824_v0 = vld [vmem:[#allocation8 + $0x28] sm:$0xff]  }
  0xde   :  { %1016 = vmatpush1.bf16.msra.mxu0 %v1737_v1  ;;  %v1825_v1 = vld [vmem:[#allocation8 + $0x30] sm:$0xff]  }
  0xdf   :  { %1017 = vmatprep.subr.bf16.mxu0 %v1745_v2  ;;  %v1826_v2 = vld [vmem:[#allocation8 + $0x38] sm:$0xff]  }
  0xe2   :  { %1018 = vmatpush1.bf16.msra.mxu0 %v1743_v3 }
  0xe3   :  { %1019 = vmatprep.subr.bf16.mxu0 %v1751_v4  ;;  %v1510_v4 = vld [vmem:[%s2055_s4] ss:$0 sm:$0xff] }
  0xe6   :  { %1020 = vmatpush1.bf16.msra.mxu0 %v1749_v5 }
  0xe7   :  { %1021 = vmatprep.subr.bf16.mxu0 %v1757_v6 }
  0xea   :  { %1022 = vmatpush1.bf16.msra.mxu0 %v1755_v7 }
  0xeb   :  { %1023 = vmatprep.subr.bf16.mxu0 %v1763_v8 }
  0xee   :  { %1024 = vmatpush1.bf16.msra.mxu0 %v1761_v9 }
  0xef   :  { %1025 = vmatprep.subr.bf16.mxu0 %v1769_v10 }
  0xf2   :  { %1026 = vmatpush1.bf16.msra.mxu0 %v1767_v11 }
  0xf3   :  { %1027 = vmatprep.subr.bf16.mxu0 %v1775_v12 }
  0xf6   :  { %1028 = vmatpush1.bf16.msra.mxu0 %v1773_v13  ;;  %v1527_v13 = vld [vmem:[%s2057_s6] ss:$0 sm:$0xff] }
  0xf7   :  { %1029 = vmatprep.subr.bf16.mxu0 %v1781_v14 }
  0xfa   :  { %1030 = vmatpush1.bf16.msra.mxu0 %v1779_v15 }
  0xfb   :  { %1031 = vmatprep.subr.bf16.mxu0 %v1787_v16 }
  0xfe   :  { %1032 = vmatpush1.bf16.msra.mxu0 %v1785_v17 }
  0xff   :  { %1033 = vmatprep.subr.bf16.mxu0 %v1793_v18 }
 0x102   :  { %1034 = vmatpush1.bf16.msra.mxu0 %v1791_v19 }
 0x103   :  { %1035 = vmatprep.subr.bf16.mxu0 %v1799_v20  ;;  %v1536_v20 = vld [vmem:[%s2058_s7] ss:$0 sm:$0xff] }
 0x106   :  { %1036 = vmatpush1.bf16.msra.mxu0 %v1797_v21 }
 0x107   :  { %1037 = vmatprep.subr.bf16.mxu0 %v1802_v22 }
 0x10a   :  { %1038 = vmatpush1.bf16.msra.mxu0 %v1800_v23  ;;  %v1537_v23 = vld [vmem:[#allocation2] ss:$0 sm:$0xff] }
 0x10d   :  { %1040 = vmatmul.mubr.bf16.vlgmr.msra.gmra.mrb[0].mxu0 %v102_v25 }
 0x169   :  { %v918_v34 = vpop.f32.mrb[0].mxu1 }
 0x16a   :  { %v920_v35 = vpop.f32.mrb[1].mxu1  ;;  %v919_v45 = vadd.f32 %v918_v34, %v237_v43 }
 0x16b   :  { %v922_v36 = vpop.f32.mrb[2].mxu1  ;;  %v921_v46 = vadd.f32 %v920_v35, %v241_v44 }
 0x16c   :  { %v923_v37 = vpop.f32.mrb[3].mxu1 }
 0x1e0   :  { %v1041_v47 = vpop.f32.mrb[0].mxu0 }
 0x1e1   :  { %v1590_v48 = vadd.f32 %v1041_v47, %v919_v45  ;;  %v1043_v49 = vpop.f32.mrb[1].mxu0 }
 0x1e2   :  { %v1592_v50 = vadd.f32 %v1043_v49, %v921_v46  ;;  %v1045_v51 = vpop.f32.mrb[2].mxu0 }
 0x1e3   :  { %vm1048_vm0 = vcmp.gt.f32.partialorder %v1590_v48, 0.0  ;;  %v1050_v52 = vmul.f32 0.2, %v1590_v48  ;;  %v1046_v53 = vpop.f32.mrb[3].mxu0 }
 0x1e4   :  { %vm1049_vm1 = vcmp.gt.f32.partialorder %v1592_v50, 0.0  ;;  %v1051_v54 = vmul.f32 0.2, %v1592_v50 }
 0x1e5   :  { %v1052_v55 = vsel %vm1048_vm0, %v1590_v48, %v1050_v52 }
 0x1e6   :  { %v1053_v56 = vsel %vm1049_vm1, %v1592_v50, %v1051_v54  ;;  %v1054_v59 = vpack.c.bf16 %v1052_v55, %v1052_v55 }
 0x1e7   :  { %v1055_v57 = vpack.c.bf16 %v1053_v56, %v1053_v56 }
 0x1e9   :  { %1223 = vmatprep.mubr.bf16.mxu1 %v1055_v57 }
 0x1ea   :  { %1224 = vmatmul.mubr.bf16.vlgmr.msra.gmra.mrb[4].mxu1 %v1054_v59 }
 0x1eb   :  { %1570 = vmatpush3.bf16.msra.mxu1 %v1819_v58  ;;  %1585 = vmatprep.mubr.msk.bf16.mxu1 %vm1934_vm2, %v1933_v33 }
 0x1ec   :  { %1571 = vmatprep.subr.bf16.mxu1 %v1933_v33 }
 0x1ef   :  { %1572 = vmatpush3.bf16.msra.mxu1 %v1820_v60 }
 0x1f0   :  { %1573 = vmatprep.subr.bf16.mxu1 %v1933_v33 }
 0x1f3   :  { %1574 = vmatpush3.bf16.msra.mxu1 %v1821_v61 }
 0x1f4   :  { %1575 = vmatprep.subr.bf16.mxu1 %v1933_v33 }
 0x1f7   :  { %1576 = vmatpush3.bf16.msra.mxu1 %v1822_v62 }
 0x1f8   :  { %1577 = vmatprep.subr.bf16.mxu1 %v1933_v33 }
 0x1fb   :  { %1578 = vmatpush3.bf16.msra.mxu1 %v1823_v63 }
 0x1fc   :  { %1579 = vmatprep.subr.bf16.mxu1 %v1933_v33 }
 0x1ff   :  { %1580 = vmatpush3.bf16.msra.mxu1 %v1824_v0 }
 0x200   :  { %1581 = vmatprep.subr.bf16.mxu1 %v1933_v33 }
 0x203   :  { %1582 = vmatpush3.bf16.msra.mxu1 %v1825_v1 }
 0x204   :  { %1583 = vmatprep.subr.bf16.mxu1 %v1933_v33 }
 0x207   :  { %1584 = vmatpush3.bf16.msra.mxu1 %v1826_v2 }
 0x2bd   :  { %v1554_v3 = vpop.f32.mrb[4].mxu1 }
 0x2be   :  { %v1555_v5 = vpop.f32.mrb[5].mxu1 }
 0x2bf   :  { %v1556_v6 = vadd.f32 %v1555_v5, %v1554_v3  ;;  %v1557_v7 = vpop.f32.mrb[6].mxu1 }
 0x2c0   :  { %v1558_v8 = vpop.f32.mrb[7].mxu1 }
 0x2c1   :  { %v1226_v9 = vadd.f32 %v1556_v6, %v1510_v4 }
 0x2c3   :  { %vm1231_vm3 = vcmp.gt.f32.partialorder %v1226_v9, 0.0  ;;  %v1232_v10 = vmul.f32 0.2, %v1226_v9 }
 0x2c5   :  { %v1233_v11 = vsel %vm1231_vm3, %v1226_v9, %v1232_v10 }
 0x2c6   :  { %v1234_v12 = vpack.c.bf16 %v1233_v11, %v1233_v11 }
 0x2c8   :  { %1586 = vmatmul.mubr.bf16.vlgmr.msra.gmra.mrb[8].mxu1 %v1234_v12 }
 0x39b   :  { %v1340_v14 = vpop.f32.mrb[8].mxu1 }
 0x39c   :  { %v1341_v15 = vadd.f32 %v1527_v13, %v1340_v14  ;;  %v1587_v16 = vpop.f32.mrb[9].mxu1 }
 0x39d   :  { %v1343_v17 = vpop.f32.mrb[10].mxu1 }
 0x39e   :  { %v1347_v18 = vmul.f32 0.2, %v1341_v15  ;;  %v1588_v19 = vpop.f32.mrb[11].mxu1  ;;  %vm1346_vm4 = vcmp.gt.f32.partialorder %v1341_v15, 0.0 }
 0x3a0   :  { %v1348_v21 = vsel %vm1346_vm4, %v1341_v15, %v1347_v18 }
 0x3a1   :  { %v1356_v22 = vmul.f32 %v1536_v20, %v1348_v21 }
 0x3a3   :  { %1357 = vadd.xlane.f32.xlu0 %v1356_v22 }
 0x430   :  { %v1358_v24 = vpop.xlane.xlu0 %1357 }
 0x431   :  { %v1366_v25 = vadd.f32 %v1537_v23, %v1358_v24 }
 0x433   :  { %v1367_v26 = vsub.f32 0.0, %v1366_v25 }
 0x435   :  { %v1368_v27 = vmul.f32 1.442695, %v1367_v26 }
 0x437   :  { %1827 = vpow2.f32 %v1368_v27 }
 0x441   :  { %v1828_v28 = vpop.eup %1827 }
 0x442   :  { %v1370_v29 = vadd.f32 1.0, %v1828_v28 }
 0x444   :  { %1829 = vrcp.f32 %v1370_v29 }
 0x44e   :  { %v1830_v30 = vpop.eup %1829 }
 0x44f   :  { %1374 = vst.msk [vmem:[%s2060_s9] sm:$0xff] %vm1373_vm5, %v1830_v30 }
 0x450   :  { %1379 = vsyncpa [#allocation4], 1 }
 0x451   :  { %1380 = vsyncpa [#allocation6], 1 }
 0x452   :  { %1381 = vsyncpa [#allocation9], 1 }

</bundles_post_ra>
